<compile_context>
chip_gen: v7x
topology: tpu7x:2x2x1
jax: 0.10.0
libtpu: 0.0.40
codegen_flags: <defaults>
</compile_context>

<pallas_src>
import functools

import jax
import jax.numpy as jnp
from jax.experimental import pallas as pl
from jax.experimental.pallas import tpu as pltpu

SEG = 128  # per-sequence lane segment width (keeps every sequence 128-aligned)


def _round_up(x, m):
    return (x + m - 1) // m * m


# ---------------------------------------------------------------------------
# Fused Pallas kernel: whole encoder+decoder in one invocation.
# cfg is a static tuple of per-layer (K, pad, cin, cin_pad, L_in, L_out, act).
# refs = [x, (w, b, mask) per layer, out, patch scratch per layer]
# ---------------------------------------------------------------------------
def _autoencoder_fused_kernel(*refs, n_layers, nl, cfg):
    x_ref = refs[0]                              # (cin_pad0, nl)
    lrefs = refs[1:1 + 3 * n_layers]             # w (Cout,K*Cin_pad), b (Cout,1), mask (1,nl)
    o_ref = refs[1 + 3 * n_layers]               # (cout_last, nl)
    p_refs = refs[2 + 3 * n_layers:]             # per-layer im2col VMEM scratch

    act = x_ref[...].astype(jnp.float32)         # (cin_pad0, nl)
    for li, (K, pad, cin, cin_pad, l_in, l_out, act_kind) in enumerate(cfg):
        w_ref = lrefs[3 * li]
        b_ref = lrefs[3 * li + 1]
        m_ref = lrefs[3 * li + 2]
        p_ref = p_refs[li]                       # (K*cin_pad, nl)
        rows = act.shape[0]                      # <= cin_pad

        # Zeroed scratch supplies the conv / transposed-conv zero padding,
        # the cin -> cin_pad filler rows, and the segment-edge guard columns.
        p_ref[...] = jnp.zeros(p_ref.shape, jnp.float32)

        # im2col via K whole-row-block shifted copies.  Because every
        # sequence owns a SEG-wide lane segment whose columns >= l_in are
        # zero, a single global column shift per kernel tap is correct for
        # all sequences at once (cross-segment spill lands on zeros; junk
        # columns are masked after the matmul).
        for k in range(K):
            s = k - pad                          # signed source-column shift
            r0 = k * cin_pad
            if s >= 0:
                p_ref[r0:r0 + rows, 0:nl - s] = act[:, s:]
            else:
                p_ref[r0:r0 + rows, -s:nl] = act[:, :nl + s]

        # One MXU matmul per layer, fused bias + ReLU (+ final Tanh), then
        # zero the out-of-range columns so the next layer's implicit zero
        # padding stays valid.
        out = jnp.dot(w_ref[...], p_ref[...], preferred_element_type=jnp.float32)
        out = jnp.maximum(out + b_ref[...], 0.0)     # Conv/ConvT bias + ReLU
        if act_kind == "relu_tanh":
            out = jnp.tanh(out)                      # final decoder Tanh
        act = out * m_ref[...]

    o_ref[...] = act.astype(o_ref.dtype)             # lane-dense (mult. of 128)


# ---------------------------------------------------------------------------
# Forward pass: single pallas_call over the whole network.
# ---------------------------------------------------------------------------
def autoencoder_forward(x, layers, seg=SEG):
    N, c0, L0 = x.shape
    assert c0 == layers[0]["cin"], (c0, layers[0]["cin"])

    # Static per-layer length bookkeeping (stride-1 valid conv on a
    # `pad`-zero-padded input).
    cfg = []
    L = L0
    for lp in layers:
        L_out = L + 2 * lp["pad"] - lp["K"] + 1
        assert 1 <= L_out <= seg and L + lp["pad"] <= seg, (L, lp["K"], lp["pad"])
        cfg.append((lp["K"], lp["pad"], lp["cin"], lp["cin_pad"],
                    L, L_out, lp["act"]))
        L = L_out
    c_last = layers[-1]["cout"]
    L_last = L
    nl = N * seg
    cin_pad0 = layers[0]["cin_pad"]

    # Lane-segment layout plumbing in XLA (outside the kernel): each sequence
    # occupies columns [n*seg, n*seg + L0) and everything else is zero.
    x32 = x.astype(jnp.float32)
    x_lay = jnp.pad(x32, ((0, 0), (0, cin_pad0 - c0), (0, seg - L0)))
    x_lay = jnp.transpose(x_lay, (1, 0, 2)).reshape(cin_pad0, nl)

    col = jnp.arange(seg)
    operands = [x_lay]
    in_specs = [pl.BlockSpec((cin_pad0, nl), lambda i: (0, 0))]
    for lp, c in zip(layers, cfg):
        l_out = c[5]
        mask = jnp.tile((col < l_out).astype(jnp.float32), (N,))[None, :]
        operands += [lp["w_flat"], lp["b_col"], mask]
        in_specs += [pl.BlockSpec(lp["w_flat"].shape, lambda i: (0, 0)),
                     pl.BlockSpec(lp["b_col"].shape, lambda i: (0, 0)),
                     pl.BlockSpec((1, nl), lambda i: (0, 0))]

    kernel = functools.partial(_autoencoder_fused_kernel,
                               n_layers=len(cfg), nl=nl, cfg=tuple(cfg))

    # Per-layer im2col scratch: (K*cin_pad, N*seg) f32 (tens of KB each).
    scratch_shapes = [pltpu.VMEM((c[0] * c[3], nl), jnp.float32) for c in cfg]

    y = pl.pallas_call(
        kernel,
        out_shape=jax.ShapeDtypeStruct((c_last, nl), jnp.float32),
        grid_spec=pltpu.PrefetchScalarGridSpec(
            num_scalar_prefetch=0,
            grid=(1,),
            in_specs=in_specs,
            out_specs=pl.BlockSpec((c_last, nl), lambda i: (0, 0)),
            scratch_shapes=scratch_shapes,
        ),
        compiler_params=pltpu.CompilerParams(
            dimension_semantics=("arbitrary",)),
    )(*operands)

    # Back to NCL layout, drop the per-sequence zero margin.
    y = y.reshape(c_last, N, seg).transpose(1, 0, 2)[:, :, :L_last]
    return y.astype(x.dtype)


# ---------------------------------------------------------------------------
# Parameter construction (deterministic, PyTorch-style uniform init) and
# one-time precomputation of all Pallas-ready weight layouts.
# ---------------------------------------------------------------------------
def _init_conv(key, cout, cin, k):
    bound = 1.0 / float(cin * k) ** 0.5
    kw, kb = jax.random.split(key)
    w = jax.random.uniform(kw, (cout, cin, k), jnp.float32, -bound, bound)
    b = jax.random.uniform(kb, (cout,), jnp.float32, -bound, bound)
    return w, b


def _init_convtranspose(key, cin, cout, k):
    bound = 1.0 / float(cin * k) ** 0.5
    kw, kb = jax.random.split(key)
    # PyTorch ConvTranspose1d weight layout: (Cin, Cout, K)
    w = jax.random.uniform(kw, (cin, cout, k), jnp.float32, -bound, bound)
    b = jax.random.uniform(kb, (cout,), jnp.float32, -bound, bound)
    return w, b


def _prep_layer(w, b, *, transpose_conv, pad, act):
    """Precompute the Pallas-ready flattened weight and static metadata."""
    if transpose_conv:
        # ConvTranspose1d(stride=1, pad=0) == Conv1d with a flipped,
        # in/out-transposed kernel over a (K-1)-zero-padded input.
        w = jnp.transpose(jnp.flip(w, axis=2), (1, 0, 2))   # -> (Cout, Cin, K)
    cout, cin, K = w.shape
    cin_pad = _round_up(cin, 8)
    # (Cout, Cin, K) -> (Cout, K, Cin) -> zero-pad Cin -> (Cout, K*Cin_pad)
    w_flat = jnp.transpose(w, (0, 2, 1))
    w_flat = jnp.pad(w_flat, ((0, 0), (0, 0), (0, cin_pad - cin)))
    w_flat = w_flat.reshape(cout, K * cin_pad)
    return dict(w_flat=w_flat, b_col=b.reshape(-1, 1), K=int(K), pad=int(pad),
                cin=int(cin), cin_pad=int(cin_pad), cout=int(cout), act=act)


def build_autoencoder_params(key, cnn_filters, cnn_kernels):
    filters = [26] + list(cnn_filters)
    n = len(filters) - 1
    layers = []   # Pallas-ready layouts (used by the kernel)
    raw = []      # PyTorch-layout params (used by the pure-JAX reference)

    # Encoder: Conv1d(filters[i] -> filters[i+1], K=cnn_kernels[i]) + ReLU
    for i in range(n):
        key, sub = jax.random.split(key)
        w, b = _init_conv(sub, filters[i + 1], filters[i], cnn_kernels[i])
        raw.append(("conv", w, b))
        layers.append(_prep_layer(w, b, transpose_conv=False, pad=0,
                                  act="relu"))

    # Decoder: ConvTranspose1d(filters[i+1] -> filters[i],
    #                          K=cnn_kernels[-i])  + ReLU, then final Tanh.
    # Note: `cnn_kernels[-i]` reproduces the PyTorch module's indexing quirk.
    for idx, i in enumerate(reversed(range(n))):
        key, sub = jax.random.split(key)
        K = cnn_kernels[-i]
        w, b = _init_convtranspose(sub, filters[i + 1], filters[i], K)
        raw.append(("convt", w, b))
        act = "relu_tanh" if idx == n - 1 else "relu"
        layers.append(_prep_layer(w, b, transpose_conv=True, pad=K - 1,
                                  act=act))
    return layers, raw


# ---------------------------------------------------------------------------
# Pure-JAX reference (independent of the kernel's im2col formulation).
# ---------------------------------------------------------------------------
def _ref_conv1d(x, w, b):
    # x: (N, Cin, L), w: (Cout, Cin, K) -- PyTorch Conv1d, stride 1, no pad.
    K = w.shape[2]
    L_out = x.shape[2] - K + 1
    y = jnp.zeros((x.shape[0], w.shape[0], L_out), jnp.float32)
    for k in range(K):
        y = y + jnp.einsum("ncl,oc->nol", x[:, :, k:k + L_out], w[:, :, k],
                           precision=jax.lax.Precision.HIGHEST)
    return y + b[None, :, None]


def _ref_convtranspose1d(x, w, b):
    # x: (N, Cin, L), w: (Cin, Cout, K) -- PyTorch ConvTranspose1d, stride 1.
    N, _, L = x.shape
    Cout, K = w.shape[1], w.shape[2]
    y = jnp.zeros((N, Cout, L + K - 1), jnp.float32)
    for j in range(L):
        y = y.at[:, :, j:j + K].add(
            jnp.einsum("nc,cok->nok", x[:, :, j], w,
                       precision=jax.lax.Precision.HIGHEST))
    return y + b[None, :, None]


def reference_forward(x, raw):
    n = len(raw)
    for idx, (kind, w, b) in enumerate(raw):
        x = _ref_conv1d(x, w, b) if kind == "conv" else _ref_convtranspose1d(x, w, b)
        x = jax.nn.relu(x)
        if idx == n - 1:
            x = jnp.tanh(x)
    return x


if __name__ == "__main__":
    key = jax.random.PRNGKey(0)
    key, kx, kp = jax.random.split(key, 3)

    # config: cnn_filters=[16, 8], cnn_kernels=[3, 5]
    cnn_filters = [16, 8]
    cnn_kernels = [3, 5]
    layers, raw = build_autoencoder_params(kp, cnn_filters, cnn_kernels)

    # Input: batch=2, 26 input channels (fixed by the module), length=32.
    x = jax.random.normal(kx, (2, 26, 32), dtype=jnp.float32)

    fwd = jax.jit(functools.partial(autoencoder_forward, layers=layers))
    out = jax.block_until_ready(fwd(x))

    assert out.shape == x.shape, (out.shape, x.shape)
    assert bool(jnp.all(jnp.isfinite(out)))

    ref = reference_forward(x, raw)
    max_err = float(jnp.max(jnp.abs(out - ref)))
    assert max_err < 5e-3, f"max abs error vs reference: {max_err}"

    print("KERNEL_OK")
</pallas_src>

<mosaic_0001>
module attributes {stable_mosaic.version = 11 : i64} {
  func.func @_autoencoder_fused_kernel(%arg0: i32, %arg1: memref<32x256xf32, #tpu.memory_space<vmem>>, %arg2: memref<16x96xf32, #tpu.memory_space<vmem>>, %arg3: memref<16x1xf32, #tpu.memory_space<vmem>>, %arg4: memref<1x256xf32, #tpu.memory_space<vmem>>, %arg5: memref<8x80xf32, #tpu.memory_space<vmem>>, %arg6: memref<8x1xf32, #tpu.memory_space<vmem>>, %arg7: memref<1x256xf32, #tpu.memory_space<vmem>>, %arg8: memref<16x40xf32, #tpu.memory_space<vmem>>, %arg9: memref<16x1xf32, #tpu.memory_space<vmem>>, %arg10: memref<1x256xf32, #tpu.memory_space<vmem>>, %arg11: memref<26x48xf32, #tpu.memory_space<vmem>>, %arg12: memref<26x1xf32, #tpu.memory_space<vmem>>, %arg13: memref<1x256xf32, #tpu.memory_space<vmem>>, %arg14: memref<26x256xf32, #tpu.memory_space<vmem>>, %arg15: memref<96x256xf32, #tpu.memory_space<vmem>>, %arg16: memref<80x256xf32, #tpu.memory_space<vmem>>, %arg17: memref<40x256xf32, #tpu.memory_space<vmem>>, %arg18: memref<48x256xf32, #tpu.memory_space<vmem>>) attributes {dimension_semantics = [#tpu.dimension_semantics<arbitrary>], iteration_bounds = array<i64: 1>, scalar_prefetch = 0 : i64, scratch_operands = 4 : i64, tpu.core_type = #tpu.core_type<tc>, window_params = [{pipeline_mode = #tpu.pipeline_mode<synchronous>, transform_indices = @transform_0, window_bounds = array<i64: 32, 256>}, {pipeline_mode = #tpu.pipeline_mode<synchronous>, transform_indices = @transform_1, window_bounds = array<i64: 16, 96>}, {pipeline_mode = #tpu.pipeline_mode<synchronous>, transform_indices = @transform_2, window_bounds = array<i64: 16, 1>}, {pipeline_mode = #tpu.pipeline_mode<synchronous>, transform_indices = @transform_3, window_bounds = array<i64: 1, 256>}, {pipeline_mode = #tpu.pipeline_mode<synchronous>, transform_indices = @transform_4, window_bounds = array<i64: 8, 80>}, {pipeline_mode = #tpu.pipeline_mode<synchronous>, transform_indices = @transform_5, window_bounds = array<i64: 8, 1>}, {pipeline_mode = #tpu.pipeline_mode<synchronous>, transform_indices = @transform_6, window_bounds = array<i64: 1, 256>}, {pipeline_mode = #tpu.pipeline_mode<synchronous>, transform_indices = @transform_7, window_bounds = array<i64: 16, 40>}, {pipeline_mode = #tpu.pipeline_mode<synchronous>, transform_indices = @transform_8, window_bounds = array<i64: 16, 1>}, {pipeline_mode = #tpu.pipeline_mode<synchronous>, transform_indices = @transform_9, window_bounds = array<i64: 1, 256>}, {pipeline_mode = #tpu.pipeline_mode<synchronous>, transform_indices = @transform_10, window_bounds = array<i64: 26, 48>}, {pipeline_mode = #tpu.pipeline_mode<synchronous>, transform_indices = @transform_11, window_bounds = array<i64: 26, 1>}, {pipeline_mode = #tpu.pipeline_mode<synchronous>, transform_indices = @transform_12, window_bounds = array<i64: 1, 256>}, {pipeline_mode = #tpu.pipeline_mode<synchronous>, transform_indices = @transform_13, window_bounds = array<i64: 26, 256>}]} {
    %c0 = arith.constant 0 : index
    %c0_0 = arith.constant 0 : index
    %0 = vector.load %arg1[%c0, %c0_0] : memref<32x256xf32, #tpu.memory_space<vmem>>, vector<32x256xf32>
    %cst = arith.constant 0.000000e+00 : f32
    %1 = vector.broadcast %cst : f32 to vector<96x256xf32>
    %c0_1 = arith.constant 0 : index
    %c0_2 = arith.constant 0 : index
    %2 = vector.load %arg15[%c0_1, %c0_2] : memref<96x256xf32, #tpu.memory_space<vmem>>, vector<96x256xf32>
    tpu.vector_store %arg15[%c0_1, %c0_2], %1 {strides = array<i32>} : memref<96x256xf32, #tpu.memory_space<vmem>>, vector<96x256xf32>,
    %c0_3 = arith.constant 0 : index
    %c0_4 = arith.constant 0 : index
    %3 = vector.load %arg15[%c0_3, %c0_4] : memref<96x256xf32, #tpu.memory_space<vmem>>, vector<32x256xf32>
    tpu.vector_store %arg15[%c0_3, %c0_4], %0 {strides = array<i32>} : memref<96x256xf32, #tpu.memory_space<vmem>>, vector<32x256xf32>,
    %4 = vector.extract_strided_slice %0 {offsets = [0, 1], sizes = [32, 255], strides = [1, 1]} : vector<32x256xf32> to vector<32x255xf32>
    %c32 = arith.constant 32 : index
    %c0_5 = arith.constant 0 : index
    %5 = vector.load %arg15[%c32, %c0_5] : memref<96x256xf32, #tpu.memory_space<vmem>>, vector<32x255xf32>
    tpu.vector_store %arg15[%c32, %c0_5], %4 {strides = array<i32>} : memref<96x256xf32, #tpu.memory_space<vmem>>, vector<32x255xf32>,
    %6 = vector.extract_strided_slice %0 {offsets = [0, 2], sizes = [32, 254], strides = [1, 1]} : vector<32x256xf32> to vector<32x254xf32>
    %c64 = arith.constant 64 : index
    %c0_6 = arith.constant 0 : index
    %7 = vector.load %arg15[%c64, %c0_6] : memref<96x256xf32, #tpu.memory_space<vmem>>, vector<32x254xf32>
    tpu.vector_store %arg15[%c64, %c0_6], %6 {strides = array<i32>} : memref<96x256xf32, #tpu.memory_space<vmem>>, vector<32x254xf32>,
    %c0_7 = arith.constant 0 : index
    %c0_8 = arith.constant 0 : index
    %8 = vector.load %arg2[%c0_7, %c0_8] : memref<16x96xf32, #tpu.memory_space<vmem>>, vector<16x96xf32>
    %c0_9 = arith.constant 0 : index
    %c0_10 = arith.constant 0 : index
    %9 = vector.load %arg15[%c0_9, %c0_10] : memref<96x256xf32, #tpu.memory_space<vmem>>, vector<96x256xf32>
    %cst_11 = arith.constant dense<0.000000e+00> : vector<16x256xf32>
    %10 = tpu.matmul %8, %9, %cst_11 {dimension_numbers = #tpu.dot_dimension_numbers<[1], [0], [0], [1], [0, 0, 1, 1], [], []>} : vector<16x96xf32>, vector<96x256xf32>, vector<16x256xf32> -> vector<16x256xf32>
    %c0_12 = arith.constant 0 : index
    %c0_13 = arith.constant 0 : index
    %11 = vector.load %arg3[%c0_12, %c0_13] : memref<16x1xf32, #tpu.memory_space<vmem>>, vector<16x1xf32>
    %12 = vector.broadcast %11 : vector<16x1xf32> to vector<16x256xf32>
    %13 = arith.addf %10, %12 : vector<16x256xf32>
    %cst_14 = arith.constant 0.000000e+00 : f32
    %14 = vector.broadcast %cst_14 : f32 to vector<16x256xf32>
    %15 = arith.maximumf %13, %14 : vector<16x256xf32>
    %c0_15 = arith.constant 0 : index
    %c0_16 = arith.constant 0 : index
    %16 = vector.load %arg4[%c0_15, %c0_16] : memref<1x256xf32, #tpu.memory_space<vmem>>, vector<1x256xf32>
    %17 = vector.broadcast %16 : vector<1x256xf32> to vector<16x256xf32>
    %18 = arith.mulf %15, %17 : vector<16x256xf32>
    %cst_17 = arith.constant 0.000000e+00 : f32
    %19 = vector.broadcast %cst_17 : f32 to vector<80x256xf32>
    %c0_18 = arith.constant 0 : index
    %c0_19 = arith.constant 0 : index
    %20 = vector.load %arg16[%c0_18, %c0_19] : memref<80x256xf32, #tpu.memory_space<vmem>>, vector<80x256xf32>
    tpu.vector_store %arg16[%c0_18, %c0_19], %19 {strides = array<i32>} : memref<80x256xf32, #tpu.memory_space<vmem>>, vector<80x256xf32>,
    %c0_20 = arith.constant 0 : index
    %c0_21 = arith.constant 0 : index
    %21 = vector.load %arg16[%c0_20, %c0_21] : memref<80x256xf32, #tpu.memory_space<vmem>>, vector<16x256xf32>
    tpu.vector_store %arg16[%c0_20, %c0_21], %18 {strides = array<i32>} : memref<80x256xf32, #tpu.memory_space<vmem>>, vector<16x256xf32>,
    %22 = vector.extract_strided_slice %18 {offsets = [0, 1], sizes = [16, 255], strides = [1, 1]} : vector<16x256xf32> to vector<16x255xf32>
    %c16 = arith.constant 16 : index
    %c0_22 = arith.constant 0 : index
    %23 = vector.load %arg16[%c16, %c0_22] : memref<80x256xf32, #tpu.memory_space<vmem>>, vector<16x255xf32>
    tpu.vector_store %arg16[%c16, %c0_22], %22 {strides = array<i32>} : memref<80x256xf32, #tpu.memory_space<vmem>>, vector<16x255xf32>,
    %24 = vector.extract_strided_slice %18 {offsets = [0, 2], sizes = [16, 254], strides = [1, 1]} : vector<16x256xf32> to vector<16x254xf32>
    %c32_23 = arith.constant 32 : index
    %c0_24 = arith.constant 0 : index
    %25 = vector.load %arg16[%c32_23, %c0_24] : memref<80x256xf32, #tpu.memory_space<vmem>>, vector<16x254xf32>
    tpu.vector_store %arg16[%c32_23, %c0_24], %24 {strides = array<i32>} : memref<80x256xf32, #tpu.memory_space<vmem>>, vector<16x254xf32>,
    %26 = vector.extract_strided_slice %18 {offsets = [0, 3], sizes = [16, 253], strides = [1, 1]} : vector<16x256xf32> to vector<16x253xf32>
    %c48 = arith.constant 48 : index
    %c0_25 = arith.constant 0 : index
    %27 = vector.load %arg16[%c48, %c0_25] : memref<80x256xf32, #tpu.memory_space<vmem>>, vector<16x253xf32>
    tpu.vector_store %arg16[%c48, %c0_25], %26 {strides = array<i32>} : memref<80x256xf32, #tpu.memory_space<vmem>>, vector<16x253xf32>,
    %28 = vector.extract_strided_slice %18 {offsets = [0, 4], sizes = [16, 252], strides = [1, 1]} : vector<16x256xf32> to vector<16x252xf32>
    %c64_26 = arith.constant 64 : index
    %c0_27 = arith.constant 0 : index
    %29 = vector.load %arg16[%c64_26, %c0_27] : memref<80x256xf32, #tpu.memory_space<vmem>>, vector<16x252xf32>
    tpu.vector_store %arg16[%c64_26, %c0_27], %28 {strides = array<i32>} : memref<80x256xf32, #tpu.memory_space<vmem>>, vector<16x252xf32>,
    %c0_28 = arith.constant 0 : index
    %c0_29 = arith.constant 0 : index
    %30 = vector.load %arg5[%c0_28, %c0_29] : memref<8x80xf32, #tpu.memory_space<vmem>>, vector<8x80xf32>
    %c0_30 = arith.constant 0 : index
    %c0_31 = arith.constant 0 : index
    %31 = vector.load %arg16[%c0_30, %c0_31] : memref<80x256xf32, #tpu.memory_space<vmem>>, vector<80x256xf32>
    %cst_32 = arith.constant dense<0.000000e+00> : vector<8x256xf32>
    %32 = tpu.matmul %30, %31, %cst_32 {dimension_numbers = #tpu.dot_dimension_numbers<[1], [0], [0], [1], [0, 0, 1, 1], [], []>} : vector<8x80xf32>, vector<80x256xf32>, vector<8x256xf32> -> vector<8x256xf32>
    %c0_33 = arith.constant 0 : index
    %c0_34 = arith.constant 0 : index
    %33 = vector.load %arg6[%c0_33, %c0_34] : memref<8x1xf32, #tpu.memory_space<vmem>>, vector<8x1xf32>
    %34 = vector.broadcast %33 : vector<8x1xf32> to vector<8x256xf32>
    %35 = arith.addf %32, %34 : vector<8x256xf32>
    %cst_35 = arith.constant 0.000000e+00 : f32
    %36 = vector.broadcast %cst_35 : f32 to vector<8x256xf32>
    %37 = arith.maximumf %35, %36 : vector<8x256xf32>
    %c0_36 = arith.constant 0 : index
    %c0_37 = arith.constant 0 : index
    %38 = vector.load %arg7[%c0_36, %c0_37] : memref<1x256xf32, #tpu.memory_space<vmem>>, vector<1x256xf32>
    %39 = vector.broadcast %38 : vector<1x256xf32> to vector<8x256xf32>
    %40 = arith.mulf %37, %39 : vector<8x256xf32>
    %cst_38 = arith.constant 0.000000e+00 : f32
    %41 = vector.broadcast %cst_38 : f32 to vector<40x256xf32>
    %c0_39 = arith.constant 0 : index
    %c0_40 = arith.constant 0 : index
    %42 = vector.load %arg17[%c0_39, %c0_40] : memref<40x256xf32, #tpu.memory_space<vmem>>, vector<40x256xf32>
    tpu.vector_store %arg17[%c0_39, %c0_40], %41 {strides = array<i32>} : memref<40x256xf32, #tpu.memory_space<vmem>>, vector<40x256xf32>,
    %43 = vector.extract_strided_slice %40 {offsets = [0, 0], sizes = [8, 252], strides = [1, 1]} : vector<8x256xf32> to vector<8x252xf32>
    %c0_41 = arith.constant 0 : index
    %c4 = arith.constant 4 : index
    %44 = vector.load %arg17[%c0_41, %c4] : memref<40x256xf32, #tpu.memory_space<vmem>>, vector<8x252xf32>
    tpu.vector_store %arg17[%c0_41, %c4], %43 {strides = array<i32>} : memref<40x256xf32, #tpu.memory_space<vmem>>, vector<8x252xf32>,
    %45 = vector.extract_strided_slice %40 {offsets = [0, 0], sizes = [8, 253], strides = [1, 1]} : vector<8x256xf32> to vector<8x253xf32>
    %c8 = arith.constant 8 : index
    %c3 = arith.constant 3 : index
    %46 = vector.load %arg17[%c8, %c3] : memref<40x256xf32, #tpu.memory_space<vmem>>, vector<8x253xf32>
    tpu.vector_store %arg17[%c8, %c3], %45 {strides = array<i32>} : memref<40x256xf32, #tpu.memory_space<vmem>>, vector<8x253xf32>,
    %47 = vector.extract_strided_slice %40 {offsets = [0, 0], sizes = [8, 254], strides = [1, 1]} : vector<8x256xf32> to vector<8x254xf32>
    %c16_42 = arith.constant 16 : index
    %c2 = arith.constant 2 : index
    %48 = vector.load %arg17[%c16_42, %c2] : memref<40x256xf32, #tpu.memory_space<vmem>>, vector<8x254xf32>
    tpu.vector_store %arg17[%c16_42, %c2], %47 {strides = array<i32>} : memref<40x256xf32, #tpu.memory_space<vmem>>, vector<8x254xf32>,
    %49 = vector.extract_strided_slice %40 {offsets = [0, 0], sizes = [8, 255], strides = [1, 1]} : vector<8x256xf32> to vector<8x255xf32>
    %c24 = arith.constant 24 : index
    %c1 = arith.constant 1 : index
    %50 = vector.load %arg17[%c24, %c1] : memref<40x256xf32, #tpu.memory_space<vmem>>, vector<8x255xf32>
    tpu.vector_store %arg17[%c24, %c1], %49 {strides = array<i32>} : memref<40x256xf32, #tpu.memory_space<vmem>>, vector<8x255xf32>,
    %c32_43 = arith.constant 32 : index
    %c0_44 = arith.constant 0 : index
    %51 = vector.load %arg17[%c32_43, %c0_44] : memref<40x256xf32, #tpu.memory_space<vmem>>, vector<8x256xf32>
    tpu.vector_store %arg17[%c32_43, %c0_44], %40 {strides = array<i32>} : memref<40x256xf32, #tpu.memory_space<vmem>>, vector<8x256xf32>,
    %c0_45 = arith.constant 0 : index
    %c0_46 = arith.constant 0 : index
    %52 = vector.load %arg8[%c0_45, %c0_46] : memref<16x40xf32, #tpu.memory_space<vmem>>, vector<16x40xf32>
    %c0_47 = arith.constant 0 : index
    %c0_48 = arith.constant 0 : index
    %53 = vector.load %arg17[%c0_47, %c0_48] : memref<40x256xf32, #tpu.memory_space<vmem>>, vector<40x256xf32>
    %cst_49 = arith.constant dense<0.000000e+00> : vector<16x256xf32>
    %54 = tpu.matmul %52, %53, %cst_49 {dimension_numbers = #tpu.dot_dimension_numbers<[1], [0], [0], [1], [0, 0, 1, 1], [], []>} : vector<16x40xf32>, vector<40x256xf32>, vector<16x256xf32> -> vector<16x256xf32>
    %c0_50 = arith.constant 0 : index
    %c0_51 = arith.constant 0 : index
    %55 = vector.load %arg9[%c0_50, %c0_51] : memref<16x1xf32, #tpu.memory_space<vmem>>, vector<16x1xf32>
    %56 = vector.broadcast %55 : vector<16x1xf32> to vector<16x256xf32>
    %57 = arith.addf %54, %56 : vector<16x256xf32>
    %cst_52 = arith.constant 0.000000e+00 : f32
    %58 = vector.broadcast %cst_52 : f32 to vector<16x256xf32>
    %59 = arith.maximumf %57, %58 : vector<16x256xf32>
    %c0_53 = arith.constant 0 : index
    %c0_54 = arith.constant 0 : index
    %60 = vector.load %arg10[%c0_53, %c0_54] : memref<1x256xf32, #tpu.memory_space<vmem>>, vector<1x256xf32>
    %61 = vector.broadcast %60 : vector<1x256xf32> to vector<16x256xf32>
    %62 = arith.mulf %59, %61 : vector<16x256xf32>
    %cst_55 = arith.constant 0.000000e+00 : f32
    %63 = vector.broadcast %cst_55 : f32 to vector<48x256xf32>
    %c0_56 = arith.constant 0 : index
    %c0_57 = arith.constant 0 : index
    %64 = vector.load %arg18[%c0_56, %c0_57] : memref<48x256xf32, #tpu.memory_space<vmem>>, vector<48x256xf32>
    tpu.vector_store %arg18[%c0_56, %c0_57], %63 {strides = array<i32>} : memref<48x256xf32, #tpu.memory_space<vmem>>, vector<48x256xf32>,
    %65 = vector.extract_strided_slice %62 {offsets = [0, 0], sizes = [16, 254], strides = [1, 1]} : vector<16x256xf32> to vector<16x254xf32>
    %c0_58 = arith.constant 0 : index
    %c2_59 = arith.constant 2 : index
    %66 = vector.load %arg18[%c0_58, %c2_59] : memref<48x256xf32, #tpu.memory_space<vmem>>, vector<16x254xf32>
    tpu.vector_store %arg18[%c0_58, %c2_59], %65 {strides = array<i32>} : memref<48x256xf32, #tpu.memory_space<vmem>>, vector<16x254xf32>,
    %67 = vector.extract_strided_slice %62 {offsets = [0, 0], sizes = [16, 255], strides = [1, 1]} : vector<16x256xf32> to vector<16x255xf32>
    %c16_60 = arith.constant 16 : index
    %c1_61 = arith.constant 1 : index
    %68 = vector.load %arg18[%c16_60, %c1_61] : memref<48x256xf32, #tpu.memory_space<vmem>>, vector<16x255xf32>
    tpu.vector_store %arg18[%c16_60, %c1_61], %67 {strides = array<i32>} : memref<48x256xf32, #tpu.memory_space<vmem>>, vector<16x255xf32>,
    %c32_62 = arith.constant 32 : index
    %c0_63 = arith.constant 0 : index
    %69 = vector.load %arg18[%c32_62, %c0_63] : memref<48x256xf32, #tpu.memory_space<vmem>>, vector<16x256xf32>
    tpu.vector_store %arg18[%c32_62, %c0_63], %62 {strides = array<i32>} : memref<48x256xf32, #tpu.memory_space<vmem>>, vector<16x256xf32>,
    %c0_64 = arith.constant 0 : index
    %c0_65 = arith.constant 0 : index
    %70 = vector.load %arg11[%c0_64, %c0_65] : memref<26x48xf32, #tpu.memory_space<vmem>>, vector<26x48xf32>
    %c0_66 = arith.constant 0 : index
    %c0_67 = arith.constant 0 : index
    %71 = vector.load %arg18[%c0_66, %c0_67] : memref<48x256xf32, #tpu.memory_space<vmem>>, vector<48x256xf32>
    %cst_68 = arith.constant dense<0.000000e+00> : vector<26x256xf32>
    %72 = tpu.matmul %70, %71, %cst_68 {dimension_numbers = #tpu.dot_dimension_numbers<[1], [0], [0], [1], [0, 0, 1, 1], [], []>} : vector<26x48xf32>, vector<48x256xf32>, vector<26x256xf32> -> vector<26x256xf32>
    %c0_69 = arith.constant 0 : index
    %c0_70 = arith.constant 0 : index
    %73 = vector.load %arg12[%c0_69, %c0_70] : memref<26x1xf32, #tpu.memory_space<vmem>>, vector<26x1xf32>
    %74 = vector.broadcast %73 : vector<26x1xf32> to vector<26x256xf32>
    %75 = arith.addf %72, %74 : vector<26x256xf32>
    %cst_71 = arith.constant 0.000000e+00 : f32
    %76 = vector.broadcast %cst_71 : f32 to vector<26x256xf32>
    %77 = arith.maximumf %75, %76 : vector<26x256xf32>
    %78 = math.tanh %77 : vector<26x256xf32>
    %c0_72 = arith.constant 0 : index
    %c0_73 = arith.constant 0 : index
    %79 = vector.load %arg13[%c0_72, %c0_73] : memref<1x256xf32, #tpu.memory_space<vmem>>, vector<1x256xf32>
    %80 = vector.broadcast %79 : vector<1x256xf32> to vector<26x256xf32>
    %81 = arith.mulf %78, %80 : vector<26x256xf32>
    %c0_74 = arith.constant 0 : index
    %c0_75 = arith.constant 0 : index
    %82 = vector.load %arg14[%c0_74, %c0_75] : memref<26x256xf32, #tpu.memory_space<vmem>>, vector<26x256xf32>
    tpu.vector_store %arg14[%c0_74, %c0_75], %81 {strides = array<i32>} : memref<26x256xf32, #tpu.memory_space<vmem>>, vector<26x256xf32>,
    return
  }
  func.func @transform_0(%arg0: i32) -> (i32, i32) {
    %c0_i32 = arith.constant 0 : i32
    %c0_i32_0 = arith.constant 0 : i32
    %c0_i32_1 = arith.constant 0 : i32
    return %c0_i32, %c0_i32_0 : i32, i32
  }
  func.func @transform_1(%arg0: i32) -> (i32, i32) {
    %c0_i32 = arith.constant 0 : i32
    %c0_i32_0 = arith.constant 0 : i32
    %c0_i32_1 = arith.constant 0 : i32
    return %c0_i32, %c0_i32_0 : i32, i32
  }
  func.func @transform_2(%arg0: i32) -> (i32, i32) {
    %c0_i32 = arith.constant 0 : i32
    %c0_i32_0 = arith.constant 0 : i32
    %c0_i32_1 = arith.constant 0 : i32
    return %c0_i32, %c0_i32_0 : i32, i32
  }
  func.func @transform_3(%arg0: i32) -> (i32, i32) {
    %c0_i32 = arith.constant 0 : i32
    %c0_i32_0 = arith.constant 0 : i32
    %c0_i32_1 = arith.constant 0 : i32
    return %c0_i32, %c0_i32_0 : i32, i32
  }
  func.func @transform_4(%arg0: i32) -> (i32, i32) {
    %c0_i32 = arith.constant 0 : i32
    %c0_i32_0 = arith.constant 0 : i32
    %c0_i32_1 = arith.constant 0 : i32
    return %c0_i32, %c0_i32_0 : i32, i32
  }
  func.func @transform_5(%arg0: i32) -> (i32, i32) {
    %c0_i32 = arith.constant 0 : i32
    %c0_i32_0 = arith.constant 0 : i32
    %c0_i32_1 = arith.constant 0 : i32
    return %c0_i32, %c0_i32_0 : i32, i32
  }
  func.func @transform_6(%arg0: i32) -> (i32, i32) {
    %c0_i32 = arith.constant 0 : i32
    %c0_i32_0 = arith.constant 0 : i32
    %c0_i32_1 = arith.constant 0 : i32
    return %c0_i32, %c0_i32_0 : i32, i32
  }
  func.func @transform_7(%arg0: i32) -> (i32, i32) {
    %c0_i32 = arith.constant 0 : i32
    %c0_i32_0 = arith.constant 0 : i32
    %c0_i32_1 = arith.constant 0 : i32
    return %c0_i32, %c0_i32_0 : i32, i32
  }
  func.func @transform_8(%arg0: i32) -> (i32, i32) {
    %c0_i32 = arith.constant 0 : i32
    %c0_i32_0 = arith.constant 0 : i32
    %c0_i32_1 = arith.constant 0 : i32
    return %c0_i32, %c0_i32_0 : i32, i32
  }
  func.func @transform_9(%arg0: i32) -> (i32, i32) {
    %c0_i32 = arith.constant 0 : i32
    %c0_i32_0 = arith.constant 0 : i32
    %c0_i32_1 = arith.constant 0 : i32
    return %c0_i32, %c0_i32_0 : i32, i32
  }
  func.func @transform_10(%arg0: i32) -> (i32, i32) {
    %c0_i32 = arith.constant 0 : i32
    %c0_i32_0 = arith.constant 0 : i32
    %c0_i32_1 = arith.constant 0 : i32
    return %c0_i32, %c0_i32_0 : i32, i32
  }
  func.func @transform_11(%arg0: i32) -> (i32, i32) {
    %c0_i32 = arith.constant 0 : i32
    %c0_i32_0 = arith.constant 0 : i32
    %c0_i32_1 = arith.constant 0 : i32
    return %c0_i32, %c0_i32_0 : i32, i32
  }
  func.func @transform_12(%arg0: i32) -> (i32, i32) {
    %c0_i32 = arith.constant 0 : i32
    %c0_i32_0 = arith.constant 0 : i32
    %c0_i32_1 = arith.constant 0 : i32
    return %c0_i32, %c0_i32_0 : i32, i32
  }
  func.func @transform_13(%arg0: i32) -> (i32, i32) {
    %c0_i32 = arith.constant 0 : i32
    %c0_i32_0 = arith.constant 0 : i32
    %c0_i32_1 = arith.constant 0 : i32
    return %c0_i32, %c0_i32_0 : i32, i32
  }
}

</mosaic_0001>

<bundles_post_ra>
// kernel: tile.23
= control target key start
LH: loop header
LB: loop body
LE: loop exit
PB: predicated region body
PF: predicated region fallthrough
CT: control target
= control target key end

     0   :  { %s22_s0 = inlined_call_operand.vmem [shape: f32[128], index: 0, kind: input, shape index: {}]   ;;  %s23_s1 = inlined_call_operand.vmem [shape: f32[2,128], index: 1, kind: output, shape index: {}]  }
   0x1   :  { %v4_v0 = vld [vmem:[%s22_s0] ss:$0 sm:$0xff] }
   0x2   :  { %5 = vst [vmem:[%s23_s1] sm:$0x3] %v4_v0 }

// kernel: autoencoder_forward.1
= control target key start
LH: loop header
LB: loop body
LE: loop exit
PB: predicated region body
PF: predicated region fallthrough
CT: control target
= control target key end

     0   :  { %v1067_v1 = vmov 0.0   ;;  %s1068_s14 = smov 127   ;;  %v1070_v13 = vmov 0   ;;  %vm108_vm0 = vcmask 1039360   ;;  %vm145_vm1 = vcmask 1031168   ;;  %s1074_s22 = smov 3   ;;  %s1386_s0 = inlined_call_operand.vmem [shape: f32[32,256], index: 0, kind: input, shape index: {}]   ;;  %s1387_s2 = inlined_call_operand.vmem [shape: f32[16,1], index: 2, kind: input, shape index: {}]   ;;  %s1388_s1 = inlined_call_operand.vmem [shape: f32[16,96], index: 1, kind: input, shape index: {}]   ;;  %s1389_s3 = inlined_call_operand.vmem [shape: f32[1,256], index: 3, kind: input, shape index: {}, may-alias: {3,9}]   ;;  %s1390_s5 = inlined_call_operand.vmem [shape: f32[8,1], index: 5, kind: input, shape index: {}]   ;;  %s1391_s4 = inlined_call_operand.vmem [shape: f32[8,80], index: 4, kind: input, shape index: {}]   ;;  %s1392_s6 = inlined_call_operand.vmem [shape: f32[1,256], index: 6, kind: input, shape index: {}]   ;;  %s1393_s8 = inlined_call_operand.vmem [shape: f32[16,1], index: 8, kind: input, shape index: {}]   ;;  %s1394_s7 = inlined_call_operand.vmem [shape: f32[16,40], index: 7, kind: input, shape index: {}]   ;;  %s1395_s9 = inlined_call_operand.vmem [shape: f32[1,256], index: 9, kind: input, shape index: {}, may-alias: {3,9}]   ;;  %s1396_s11 = inlined_call_operand.vmem [shape: f32[26,1], index: 11, kind: input, shape index: {}]   ;;  %s1397_s10 = inlined_call_operand.vmem [shape: f32[26,48], index: 10, kind: input, shape index: {}]   ;;  %s1398_s12 = inlined_call_operand.vmem [shape: f32[1,256], index: 12, kind: input, shape index: {}]   ;;  %s1399_s13 = inlined_call_operand.vmem [shape: f32[26,256], index: 13, kind: output, shape index: {}]  }
   0x1   :  { %v46_v0 = vld [vmem:[%s1386_s0 + $0x10] sm:$0xff]  ;;  %61 = vst [vmem:[#allocation2 + $0x48] sm:$0xff] %v1067_v1  ;;  %63 = vst [vmem:[#allocation2 + $0x58] sm:$0xff] %v1067_v1  ;;  %v44_v2 = vld [vmem:[%s1386_s0] sm:$0xff]  ;;  %275 = vmatprep.mubr.f32.mxu0 %v1067_v1  ;;  %505 = vmatprep.mubr.f32.mxu1 %v1067_v1  ;;  %vm204_vm2 = vcmask 785408   ;;  %v294_v58 = vlaneseq  ;;  %vm380_vm3 = vcmask 1022976  }
   0x2   :  { %65 = vst [vmem:[#allocation2 + $0x68] sm:$0xff] %v1067_v1  ;;  %67 = vst [vmem:[#allocation2 + $0x78] sm:$0xff] %v1067_v1  ;;  %v47_v3 = vld [vmem:[%s1386_s0 + $0x18] sm:$0xff]  ;;  %96 = vrot.lane.b32.xlu1 %v46_v0, %s1068_s14  ;;  %92 = vrot.lane.b32.xlu0 %v44_v2, %s1068_s14  ;;  %v45_v4 = vld [vmem:[%s1386_s0 + $0x8] sm:$0xff]  ;;  %v971_v10 = vpack.c.bf16 %v46_v0, %v44_v2  ;;  %vm399_vm4 = vcmask 1014784   ;;  %vm437_vm5 = vcmask 654336  }
   0x3   :  { %69 = vst [vmem:[#allocation2 + $0x88] sm:$0xff] %v1067_v1  ;;  %71 = vst [vmem:[#allocation2 + $0x98] sm:$0xff] %v1067_v1  ;;  %v49_v5 = vld [vmem:[%s1386_s0 + $0x28] sm:$0xff]  ;;  %v48_v6 = vld [vmem:[%s1386_s0 + $0x20] sm:$0xff]  ;;  %v969_v9 = vpack.c.bf16 %v47_v3, %v45_v4  ;;  %1049 = vset.pattern.permute.xlu0 %v1070_v13  ;;  %1050 = vset.pattern.permute.xlu1 %v1070_v13  ;;  %v295_v59 = vshrl.u32 %v294_v58, 7  ;;  %s1076_s23 = smov 1  }
   0x4   :  { %73 = vst [vmem:[#allocation2 + $0xa8] sm:$0xff] %v1067_v1  ;;  %75 = vst [vmem:[#allocation2 + $0xb8] sm:$0xff] %v1067_v1  ;;  %v51_v7 = vld [vmem:[%s1386_s0 + $0x38] sm:$0xff]  ;;  %v50_v8 = vld [vmem:[%s1386_s0 + $0x30] sm:$0xff]  ;;  %s1069_s0 = smov 126   ;;  %vm548_vm6 = vcmask 1047584  }
   0x5   :  { %313 = vst [vmem:[#allocation3 + $0x28] sm:$0xff] %v1067_v1  ;;  %315 = vst [vmem:[#allocation3 + $0x38] sm:$0xff] %v1067_v1  ;;  %v973_v11 = vpack.c.bf16 %v51_v7, %v49_v5  ;;  %970 = vmatprep.subr.bf16.mxu0 %v969_v9  ;;  %v975_v12 = vpack.c.bf16 %v50_v8, %v48_v6  ;;  %v192_v14 = vld [vmem:[%s1387_s2] sm:$0xff]  ;;  %v193_v15 = vld [vmem:[%s1387_s2 + $0x8] sm:$0xff]  ;;  %v1243_v60 = vsub.s32 0, %v295_v59  ;;  %v1248_v63 = vsub.s32 1, %v295_v59 }
   0x6   :  { %317 = vst [vmem:[#allocation3 + $0x48] sm:$0xff] %v1067_v1  ;;  %319 = vst [vmem:[#allocation3 + $0x58] sm:$0xff] %v1067_v1  ;;  %98 = vrot.lane.b32.xlu1 %v47_v3, %s1068_s14  ;;  %94 = vrot.lane.b32.xlu0 %v45_v4, %s1068_s14  ;;  %v166_v56 = vld [vmem:[%s1388_s1] sm:$0xff]  ;;  %v167_v57 = vld [vmem:[%s1388_s1 + $0x8] sm:$0xff]  ;;  %s1071_s1 = smov 125   ;;  %vm544_vm7 = vcmask 31744  }
   0x7   :  { %321 = vst [vmem:[#allocation3 + $0x68] sm:$0xff] %v1067_v1  ;;  %323 = vst [vmem:[#allocation3 + $0x78] sm:$0xff] %v1067_v1  ;;  %972 = vmatpush1.bf16.msra.mxu0 %v971_v10  ;;  %v292_v62 = vld [vmem:[%s1389_s3] sm:$0x3]  ;;  %s1072_s3 = smov 124   ;;  %vm559_vm8 = vcmask 1047576  }
   0x8   :  { %325 = vst [vmem:[#allocation3 + $0x88] sm:$0xff] %v1067_v1  ;;  %327 = vst [vmem:[#allocation3 + $0x98] sm:$0xff] %v1067_v1  ;;  %974 = vmatprep.subr.bf16.mxu0 %v973_v11  ;;  %vm555_vm9 = vcmask 23552   ;;  %vm570_vm10 = vcmask 1047568   ;;  %vm566_vm11 = vcmask 15360   ;;  %vm581_vm12 = vcmask 1047560  }
   0x9   :  { %528 = vst [vmem:[#allocation4] sm:$0xff] %v1067_v1  ;;  %530 = vst [vmem:[#allocation4 + $0x10] sm:$0xff] %v1067_v1  ;;  %vm577_vm13 = vcmask 7168   ;;  %vm610_vm14 = vcmask 326656   ;;  %vm810_vm15 = vcmask 392192  }
   0xa   :  { %532 = vst [vmem:[#allocation4 + $0x20] sm:$0xff] %v1067_v1  ;;  %534 = vst [vmem:[#allocation4 + $0x30] sm:$0xff] %v1067_v1  ;;  %102 = vrot.lane.b32.xlu1 %v49_v5, %s1068_s14  ;;  %100 = vrot.lane.b32.xlu0 %v48_v6, %s1068_s14 }
   0xb   :  { %714 = vst [vmem:[#allocation5] sm:$0xff] %v1067_v1  ;;  %716 = vst [vmem:[#allocation5 + $0x10] sm:$0xff] %v1067_v1  ;;  %976 = vmatpush1.bf16.msra.mxu0 %v975_v12 }
   0xc   :  { %718 = vst [vmem:[#allocation5 + $0x20] sm:$0xff] %v1067_v1  ;;  %720 = vst [vmem:[#allocation5 + $0x30] sm:$0xff] %v1067_v1 }
   0xe   :  { %106 = vrot.lane.b32.xlu1 %v51_v7, %s1068_s14  ;;  %104 = vrot.lane.b32.xlu0 %v50_v8, %s1068_s14 }
  0x12   :  { %131 = vrot.lane.b32.xlu1 %v45_v4, %s1069_s0  ;;  %129 = vrot.lane.b32.xlu0 %v44_v2, %s1069_s0 }
  0x16   :  { %135 = vrot.lane.b32.xlu1 %v47_v3, %s1069_s0  ;;  %133 = vrot.lane.b32.xlu0 %v46_v0, %s1069_s0  ;;  %v297_v3 = vrot.slane %v292_v62, %v1243_v60 }
  0x1a   :  { %139 = vrot.lane.b32.xlu1 %v49_v5, %s1069_s0  ;;  %137 = vrot.lane.b32.xlu0 %v48_v6, %s1069_s0  ;;  %v301_v6 = vrot.slane %v292_v62, %v1248_v63 }
  0x1e   :  { %143 = vrot.lane.b32.xlu1 %v51_v7, %s1069_s0  ;;  %141 = vrot.lane.b32.xlu0 %v50_v8, %s1069_s0 }
  0x22   :  { %196 = vperm.xlu0 %1049, %v192_v14   ;;  %201 = vperm.xlu1 %1050, %v193_v15  }
  0x74   :  { %v97_v16 = vpop.permute.xlu1 %96  ;;  %v93_v17 = vpop.permute.xlu0 %92 }
  0x78   :  { %v99_v18 = vpop.permute.xlu1 %98  ;;  %v95_v19 = vpop.permute.xlu0 %94 }
  0x79   :  { %v110_v20 = vsel %vm108_vm0, %v97_v16, %v99_v18  ;;  %124 = vst.msk [vmem:[#allocation2 + $0x58] sm:$0xff] %vm108_vm0, %v99_v18  ;;  %v109_v21 = vsel %vm108_vm0, %v93_v17, %v95_v19  ;;  %122 = vst.msk [vmem:[#allocation2 + $0x48] sm:$0xff] %vm108_vm0, %v95_v19 }
  0x7a   :  { %v979_v31 = vpack.c.bf16 %v110_v20, %v109_v21 }
  0x7c   :  { %v103_v22 = vpop.permute.xlu1 %102  ;;  %v101_v23 = vpop.permute.xlu0 %100 }
  0x7d   :  { %126 = vst.msk [vmem:[#allocation2 + $0x68] sm:$0xff] %vm108_vm0, %v103_v22  ;;  %v111_v24 = vsel %vm108_vm0, %v101_v23, %v103_v22  ;;  %v431_v22 = vld [vmem:[%s1390_s5] sm:$0xff] }
  0x80   :  { %v107_v25 = vpop.permute.xlu1 %106  ;;  %v105_v26 = vpop.permute.xlu0 %104  ;;  %v177_v27 = vld [vmem:[#allocation2 + $0x48] sm:$0xff]  ;;  %v179_v28 = vld [vmem:[#allocation2 + $0x58] sm:$0xff] }
  0x81   :  { %128 = vst.msk [vmem:[#allocation2 + $0x78] sm:$0xff] %vm108_vm0, %v107_v25  ;;  %v112_v29 = vsel %vm108_vm0, %v105_v26, %v107_v25  ;;  %v977_v30 = vpack.c.bf16 %v179_v28, %v177_v27 }
  0x82   :  { %v983_v41 = vpack.c.bf16 %v112_v29, %v111_v24 }
  0x83   :  { %978 = vmatprep.subr.bf16.mxu0 %v977_v30 }
  0x84   :  { %v132_v32 = vpop.permute.xlu1 %131  ;;  %v130_v33 = vpop.permute.xlu0 %129  ;;  %980 = vmatpush1.bf16.msra.mxu0 %v979_v31  ;;  %v181_v37 = vld [vmem:[#allocation2 + $0x68] sm:$0xff] }
  0x85   :  { %159 = vst.msk [vmem:[#allocation2 + $0x88] sm:$0xff] %vm145_vm1, %v132_v32  ;;  %v146_v34 = vsel %vm145_vm1, %v130_v33, %v132_v32 }
  0x88   :  { %v136_v35 = vpop.permute.xlu1 %135  ;;  %v134_v36 = vpop.permute.xlu0 %133  ;;  %v183_v38 = vld [vmem:[#allocation2 + $0x78] sm:$0xff] }
  0x89   :  { %161 = vst.msk [vmem:[#allocation2 + $0x98] sm:$0xff] %vm145_vm1, %v136_v35  ;;  %v147_v39 = vsel %vm145_vm1, %v134_v36, %v136_v35  ;;  %v981_v40 = vpack.c.bf16 %v183_v38, %v181_v37 }
  0x8a   :  { %v987_v51 = vpack.c.bf16 %v147_v39, %v146_v34 }
  0x8b   :  { %982 = vmatprep.subr.bf16.mxu0 %v981_v40 }
  0x8c   :  { %v140_v42 = vpop.permute.xlu1 %139  ;;  %v138_v43 = vpop.permute.xlu0 %137  ;;  %984 = vmatpush1.bf16.msra.mxu0 %v983_v41  ;;  %v185_v47 = vld [vmem:[#allocation2 + $0x88] sm:$0xff] }
  0x8d   :  { %163 = vst.msk [vmem:[#allocation2 + $0xa8] sm:$0xff] %vm145_vm1, %v140_v42  ;;  %v148_v44 = vsel %vm145_vm1, %v138_v43, %v140_v42 }
  0x90   :  { %v144_v45 = vpop.permute.xlu1 %143  ;;  %v142_v46 = vpop.permute.xlu0 %141  ;;  %v187_v48 = vld [vmem:[#allocation2 + $0x98] sm:$0xff] }
  0x91   :  { %165 = vst.msk [vmem:[#allocation2 + $0xb8] sm:$0xff] %vm145_vm1, %v144_v45  ;;  %v149_v49 = vsel %vm145_vm1, %v142_v46, %v144_v45  ;;  %v985_v50 = vpack.c.bf16 %v187_v48, %v185_v47 }
  0x92   :  { %v991_v55 = vpack.c.bf16 %v149_v49, %v148_v44 }
  0x93   :  { %986 = vmatprep.subr.bf16.mxu0 %v985_v50 }
  0x94   :  { %988 = vmatpush1.bf16.msra.mxu0 %v987_v51  ;;  %v189_v52 = vld [vmem:[#allocation2 + $0xa8] sm:$0xff] }
  0x98   :  { %v191_v53 = vld [vmem:[#allocation2 + $0xb8] sm:$0xff] }
  0x99   :  { %v989_v54 = vpack.c.bf16 %v191_v53, %v189_v52 }
  0x9b   :  { %990 = vmatprep.subr.bf16.mxu0 %v989_v54 }
  0x9c   :  { %992 = vmatpush1.bf16.msra.mxu0 %v991_v55 }
  0x9f   :  { %960 = vmatmul.mubr.msk.f32.vlgmr.msra.gmra.mrb[0].mxu0 %vm204_vm2, %v166_v56 }
  0xa0   :  { %281 = vmatprep.mubr.f32.mxu0 %v1067_v1 }
  0xa1   :  { %v197_v61 = vpop.permute.xlu0 %196  ;;  %v202_v7 = vpop.permute.xlu1 %201 }
  0xa3   :  { %961 = vmatmul.mubr.msk.f32.gmra.mrb[2].mxu0 %vm204_vm2, %v167_v57 }
  0xa4   :  { %887 = vmatprep.mubr.f32.mxu0 %v1067_v1 }
 0x172   :  { %v277_v0 = vpop.f32.mrb[0].mxu0 }
 0x173   :  { %v278_v2 = vadd.f32 %v277_v0, %v197_v61  ;;  %v279_v4 = vpop.f32.mrb[1].mxu0 }
 0x174   :  { %v280_v5 = vadd.f32 %v279_v4, %v197_v61 }
 0x175   :  { %v288_v8 = vmax.f32 %v278_v2, 0.0  ;;  %v410_v2 = vld [vmem:[%s1391_s4] sm:$0xff]  ;;  %s1073_s4 = smov 4  }
 0x176   :  { %v289_v9 = vmax.f32 %v280_v5, 0.0  ;;  %v283_v10 = vpop.f32.mrb[2].mxu0 }
 0x177   :  { %v304_v11 = vmul.f32 %v297_v3, %v288_v8  ;;  %v284_v12 = vadd.f32 %v283_v10, %v202_v7  ;;  %v285_v13 = vpop.f32.mrb[3].mxu0 }
 0x178   :  { %v305_v14 = vmul.f32 %v301_v6, %v289_v9  ;;  %v286_v15 = vadd.f32 %v285_v13, %v202_v7 }
 0x179   :  { %v290_v16 = vmax.f32 %v284_v12, 0.0  ;;  %336 = vrot.lane.b32.xlu1 %v304_v11, %s1068_s14 }
 0x17a   :  { %v291_v17 = vmax.f32 %v286_v15, 0.0  ;;  %338 = vrot.lane.b32.xlu0 %v305_v14, %s1068_s14  ;;  %v598_v15 = vld [vmem:[%s1393_s8] sm:$0xff] }
 0x17b   :  { %v306_v18 = vmul.f32 %v297_v3, %v290_v16  ;;  %v514_v3 = vld [vmem:[%s1392_s6] sm:$0x3]  ;;  %s1075_s6 = smov 2   ;;  %v599_v16 = vld [vmem:[%s1393_s8 + $0x8] sm:$0xff] }
 0x17c   :  { %v307_v19 = vmul.f32 %v301_v6, %v291_v17  ;;  %v519_v7 = vrot.slane %v514_v3, %v1243_v60  ;;  %v523_v10 = vrot.slane %v514_v3, %v1248_v63  ;;  %v788_v3 = vld [vmem:[%s1396_s11 + $0x10] sm:$0xff] }
 0x17d   :  { %354 = vrot.lane.b32.xlu1 %v304_v11, %s1069_s0  ;;  %v995_v20 = vpack.c.bf16 %v306_v18, %v304_v11 }
 0x17e   :  { %356 = vrot.lane.b32.xlu0 %v305_v14, %s1069_s0  ;;  %v993_v21 = vpack.c.bf16 %v307_v19, %v305_v14 }
 0x180   :  { %994 = vmatprep.subr.bf16.mxu1 %v993_v21 }
 0x181   :  { %372 = vrot.lane.b32.xlu1 %v304_v11, %s1071_s1  ;;  %996 = vmatpush1.bf16.msra.mxu1 %v995_v20 }
 0x182   :  { %374 = vrot.lane.b32.xlu0 %v305_v14, %s1071_s1 }
 0x185   :  { %391 = vrot.lane.b32.xlu1 %v304_v11, %s1072_s3 }
 0x186   :  { %393 = vrot.lane.b32.xlu0 %v305_v14, %s1072_s3 }
 0x189   :  { %340 = vrot.lane.b32.xlu1 %v306_v18, %s1068_s14 }
 0x18a   :  { %342 = vrot.lane.b32.xlu0 %v307_v19, %s1068_s14 }
 0x18d   :  { %358 = vrot.lane.b32.xlu1 %v306_v18, %s1069_s0 }
 0x18e   :  { %360 = vrot.lane.b32.xlu0 %v307_v19, %s1069_s0 }
 0x191   :  { %376 = vrot.lane.b32.xlu1 %v306_v18, %s1071_s1 }
 0x192   :  { %378 = vrot.lane.b32.xlu0 %v307_v19, %s1071_s1 }
 0x195   :  { %395 = vrot.lane.b32.xlu1 %v306_v18, %s1072_s3 }
 0x196   :  { %397 = vrot.lane.b32.xlu0 %v307_v19, %s1072_s3 }
 0x199   :  { %434 = vperm.xlu1 %1050, %v431_v22  }
 0x1eb   :  { %v337_v23 = vpop.permute.xlu1 %336 }
 0x1ec   :  { %v339_v24 = vpop.permute.xlu0 %338 }
 0x1ed   :  { %v344_v25 = vsel %vm108_vm0, %v337_v23, %v339_v24  ;;  %351 = vst.msk [vmem:[#allocation3 + $0x28] sm:$0xff] %vm108_vm0, %v339_v24 }
 0x1ef   :  { %v355_v26 = vpop.permute.xlu1 %354 }
 0x1f0   :  { %v357_v27 = vpop.permute.xlu0 %356 }
 0x1f1   :  { %v362_v28 = vsel %vm145_vm1, %v355_v26, %v357_v27  ;;  %369 = vst.msk [vmem:[#allocation3 + $0x48] sm:$0xff] %vm145_vm1, %v357_v27 }
 0x1f3   :  { %v373_v29 = vpop.permute.xlu1 %372 }
 0x1f4   :  { %v375_v30 = vpop.permute.xlu0 %374  ;;  %v416_v43 = vld [vmem:[#allocation3 + $0x28] sm:$0xff] }
 0x1f5   :  { %v381_v31 = vsel %vm380_vm3, %v373_v29, %v375_v30  ;;  %388 = vst.msk [vmem:[#allocation3 + $0x68] sm:$0xff] %vm380_vm3, %v375_v30 }
 0x1f7   :  { %v392_v32 = vpop.permute.xlu1 %391 }
 0x1f8   :  { %v394_v33 = vpop.permute.xlu0 %393  ;;  %v420_v50 = vld [vmem:[#allocation3 + $0x48] sm:$0xff] }
 0x1f9   :  { %v400_v34 = vsel %vm399_vm4, %v392_v32, %v394_v33  ;;  %407 = vst.msk [vmem:[#allocation3 + $0x88] sm:$0xff] %vm399_vm4, %v394_v33 }
 0x1fb   :  { %v341_v35 = vpop.permute.xlu1 %340 }
 0x1fc   :  { %v343_v36 = vpop.permute.xlu0 %342  ;;  %v424_v55 = vld [vmem:[#allocation3 + $0x68] sm:$0xff] }
 0x1fd   :  { %v345_v37 = vsel %vm108_vm0, %v341_v35, %v343_v36  ;;  %353 = vst.msk [vmem:[#allocation3 + $0x38] sm:$0xff] %vm108_vm0, %v343_v36 }
 0x1fe   :  { %v999_v47 = vpack.c.bf16 %v345_v37, %v344_v25  ;;  %v586_v37 = vld [vmem:[%s1394_s7] sm:$0xff] }
 0x1ff   :  { %v359_v38 = vpop.permute.xlu1 %358 }
 0x200   :  { %v361_v39 = vpop.permute.xlu0 %360  ;;  %v428_v59 = vld [vmem:[#allocation3 + $0x88] sm:$0xff] }
 0x201   :  { %v363_v40 = vsel %vm145_vm1, %v359_v38, %v361_v39  ;;  %371 = vst.msk [vmem:[#allocation3 + $0x58] sm:$0xff] %vm145_vm1, %v361_v39  ;;  %v587_v38 = vld [vmem:[%s1394_s7 + $0x8] sm:$0xff]  ;;  %v698_v39 = vld [vmem:[%s1395_s9] sm:$0x3] }
 0x202   :  { %v1003_v54 = vpack.c.bf16 %v363_v40, %v362_v28 }
 0x203   :  { %v377_v41 = vpop.permute.xlu1 %376 }
 0x204   :  { %v379_v42 = vpop.permute.xlu0 %378  ;;  %v418_v44 = vld [vmem:[#allocation3 + $0x38] sm:$0xff] }
 0x205   :  { %v382_v45 = vsel %vm380_vm3, %v377_v41, %v379_v42  ;;  %390 = vst.msk [vmem:[#allocation3 + $0x78] sm:$0xff] %vm380_vm3, %v379_v42  ;;  %v997_v46 = vpack.c.bf16 %v418_v44, %v416_v43  ;;  %v703_v43 = vrot.slane %v698_v39, %v1243_v60 }
 0x206   :  { %v1007_v58 = vpack.c.bf16 %v382_v45, %v381_v31 }
 0x207   :  { %v396_v48 = vpop.permute.xlu1 %395  ;;  %998 = vmatprep.subr.bf16.mxu1 %v997_v46  ;;  %v707_v46 = vrot.slane %v698_v39, %v1248_v63 }
 0x208   :  { %v398_v49 = vpop.permute.xlu0 %397  ;;  %1000 = vmatpush1.bf16.msra.mxu1 %v999_v47  ;;  %v422_v51 = vld [vmem:[#allocation3 + $0x58] sm:$0xff] }
 0x209   :  { %v401_v52 = vsel %vm399_vm4, %v396_v48, %v398_v49  ;;  %409 = vst.msk [vmem:[#allocation3 + $0x98] sm:$0xff] %vm399_vm4, %v398_v49  ;;  %v1001_v53 = vpack.c.bf16 %v422_v51, %v420_v50 }
 0x20a   :  { %v1011_v0 = vpack.c.bf16 %v401_v52, %v400_v34 }
 0x20b   :  { %1002 = vmatprep.subr.bf16.mxu1 %v1001_v53 }
 0x20c   :  { %1004 = vmatpush1.bf16.msra.mxu1 %v1003_v54  ;;  %v426_v56 = vld [vmem:[#allocation3 + $0x78] sm:$0xff] }
 0x20d   :  { %v1005_v57 = vpack.c.bf16 %v426_v56, %v424_v55 }
 0x20f   :  { %1006 = vmatprep.subr.bf16.mxu1 %v1005_v57 }
 0x210   :  { %1008 = vmatpush1.bf16.msra.mxu1 %v1007_v58  ;;  %v430_v61 = vld [vmem:[#allocation3 + $0x98] sm:$0xff] }
 0x211   :  { %v1009_v62 = vpack.c.bf16 %v430_v61, %v428_v59 }
 0x213   :  { %1010 = vmatprep.subr.bf16.mxu1 %v1009_v62 }
 0x214   :  { %1012 = vmatpush1.bf16.msra.mxu1 %v1011_v0  ;;  %v786_v0 = vld [vmem:[%s1396_s11] sm:$0xff] }
 0x217   :  { %962 = vmatmul.mubr.msk.f32.vlgmr.msra.gmra.mrb[0].mxu1 %vm437_vm5, %v410_v2  ;;  %v787_v2 = vld [vmem:[%s1396_s11 + $0x8] sm:$0xff] }
 0x218   :  { %681 = vmatprep.mubr.f32.mxu1 %v1067_v1  ;;  %v435_v4 = vpop.permute.xlu1 %434 }
 0x2ea   :  { %v507_v5 = vpop.f32.mrb[0].mxu1 }
 0x2eb   :  { %v508_v6 = vadd.f32 %v507_v5, %v435_v4  ;;  %v509_v8 = vpop.f32.mrb[1].mxu1 }
 0x2ec   :  { %v510_v9 = vadd.f32 %v509_v8, %v435_v4  ;;  %v789_v4 = vld [vmem:[%s1396_s11 + $0x18] sm:$0x3] }
 0x2ed   :  { %v512_v11 = vmax.f32 %v508_v6, 0.0 }
 0x2ee   :  { %v513_v12 = vmax.f32 %v510_v9, 0.0 }
 0x2ef   :  { %v526_v13 = vmul.f32 %v519_v7, %v512_v11 }
 0x2f0   :  { %v527_v14 = vmul.f32 %v523_v10, %v513_v12 }
 0x2f1   :  { %540 = vrot.lane.b32.xlu0 %v526_v13, %s1073_s4 }
 0x2f2   :  { %542 = vrot.lane.b32.xlu1 %v527_v14, %s1073_s4 }
 0x2f5   :  { %551 = vrot.lane.b32.xlu0 %v526_v13, %s1074_s22 }
 0x2f6   :  { %553 = vrot.lane.b32.xlu1 %v527_v14, %s1074_s22 }
 0x2f9   :  { %562 = vrot.lane.b32.xlu0 %v526_v13, %s1075_s6 }
 0x2fa   :  { %564 = vrot.lane.b32.xlu1 %v527_v14, %s1075_s6 }
 0x2fd   :  { %573 = vrot.lane.b32.xlu0 %v526_v13, %s1076_s23 }
 0x2fe   :  { %575 = vrot.lane.b32.xlu1 %v527_v14, %s1076_s23 }
 0x301   :  { %602 = vperm.xlu0 %1049, %v598_v15  }
 0x302   :  { %607 = vperm.xlu1 %1050, %v599_v16  }
 0x363   :  { %v541_v17 = vpop.permute.xlu0 %540 }
 0x364   :  { %549 = vst.msk [vmem:[#allocation4] sm:$0xff] %vm548_vm6, %v541_v17  ;;  %v543_v18 = vpop.permute.xlu1 %542 }
 0x365   :  { %v545_v19 = vsel %vm544_vm7, %v541_v17, %v543_v18 }
 0x367   :  { %v552_v20 = vpop.permute.xlu0 %551 }
 0x368   :  { %560 = vst.msk [vmem:[#allocation4 + $0x10] sm:$0xff] %vm559_vm8, %v552_v20  ;;  %v554_v21 = vpop.permute.xlu1 %553 }
 0x369   :  { %v556_v22 = vsel %vm555_vm9, %v552_v20, %v554_v21 }
 0x36a   :  { %v1013_v23 = vpack.c.bf16 %v556_v22, %v545_v19 }
 0x36b   :  { %v563_v24 = vpop.permute.xlu0 %562  ;;  %v588_v28 = vld [vmem:[#allocation4] sm:$0xff] }
 0x36c   :  { %571 = vst.msk [vmem:[#allocation4 + $0x20] sm:$0xff] %vm570_vm10, %v563_v24  ;;  %v565_v25 = vpop.permute.xlu1 %564  ;;  %1014 = vmatprep.subr.bf16.mxu1 %v1013_v23 }
 0x36d   :  { %v567_v26 = vsel %vm566_vm11, %v563_v24, %v565_v25  ;;  %v770_v25 = vld [vmem:[%s1397_s10] sm:$0xff] }
 0x36f   :  { %v574_v27 = vpop.permute.xlu0 %573  ;;  %v590_v29 = vld [vmem:[#allocation4 + $0x10] sm:$0xff] }
 0x370   :  { %582 = vst.msk [vmem:[#allocation4 + $0x30] sm:$0xff] %vm581_vm12, %v574_v27  ;;  %v576_v30 = vpop.permute.xlu1 %575  ;;  %v1015_v31 = vpack.c.bf16 %v590_v29, %v588_v28  ;;  %v772_v28 = vld [vmem:[%s1397_s10 + $0x10] sm:$0xff] }
 0x371   :  { %v578_v32 = vsel %vm577_vm13, %v574_v27, %v576_v30  ;;  %v771_v27 = vld [vmem:[%s1397_s10 + $0x8] sm:$0xff] }
 0x372   :  { %1016 = vmatpush1.bf16.msra.mxu1 %v1015_v31  ;;  %v1017_v33 = vpack.c.bf16 %v578_v32, %v567_v26  ;;  %v773_v26 = vld [vmem:[%s1397_s10 + $0x18] sm:$0x3] }
 0x373   :  { %v592_v34 = vld [vmem:[#allocation4 + $0x20] sm:$0xff] }
 0x374   :  { %1018 = vmatprep.subr.bf16.mxu1 %v1017_v33 }
 0x377   :  { %v594_v35 = vld [vmem:[#allocation4 + $0x30] sm:$0xff] }
 0x378   :  { %v1019_v36 = vpack.c.bf16 %v594_v35, %v592_v34 }
 0x37a   :  { %1020 = vmatpush1.bf16.msra.mxu1 %v1019_v36 }
 0x37b   :  { %625 = vmatprep.subr.mxu1 %v527_v14 }
 0x37e   :  { %626 = vmatpush1.msra.mxu1 %v526_v13 }
 0x37f   :  { %963 = vmatmul.mubr.msk.f32.vlgmr.msra.gmra.mrb[2].mxu1 %vm610_vm14, %v586_v37 }
 0x380   :  { %687 = vmatprep.mubr.f32.mxu1 %v1067_v1  ;;  %v603_v40 = vpop.permute.xlu0 %602 }
 0x381   :  { %v608_v48 = vpop.permute.xlu1 %607 }
 0x383   :  { %964 = vmatmul.mubr.msk.f32.gmra.mrb[4].mxu1 %vm610_vm14, %v587_v38 }
 0x384   :  { %905 = vmatprep.mubr.f32.mxu1 %v1067_v1 }
 0x452   :  { %v683_v41 = vpop.f32.mrb[2].mxu1 }
 0x453   :  { %v684_v42 = vadd.f32 %v683_v41, %v603_v40  ;;  %v685_v44 = vpop.f32.mrb[3].mxu1 }
 0x454   :  { %v686_v45 = vadd.f32 %v685_v44, %v603_v40 }
 0x455   :  { %v694_v47 = vmax.f32 %v684_v42, 0.0 }
 0x456   :  { %v695_v49 = vmax.f32 %v686_v45, 0.0  ;;  %v689_v50 = vpop.f32.mrb[4].mxu1 }
 0x457   :  { %v710_v51 = vmul.f32 %v703_v43, %v694_v47  ;;  %v690_v52 = vadd.f32 %v689_v50, %v608_v48  ;;  %v691_v53 = vpop.f32.mrb[5].mxu1 }
 0x458   :  { %v711_v54 = vmul.f32 %v707_v46, %v695_v49  ;;  %v692_v55 = vadd.f32 %v691_v53, %v608_v48 }
 0x459   :  { %v696_v56 = vmax.f32 %v690_v52, 0.0  ;;  %730 = vrot.lane.b32.xlu0 %v710_v51, %s1075_s6 }
 0x45a   :  { %v697_v57 = vmax.f32 %v692_v55, 0.0  ;;  %732 = vrot.lane.b32.xlu1 %v711_v54, %s1075_s6 }
 0x45b   :  { %v712_v58 = vmul.f32 %v703_v43, %v696_v56 }
 0x45c   :  { %v713_v59 = vmul.f32 %v707_v46, %v697_v57 }
 0x45d   :  { %748 = vrot.lane.b32.xlu0 %v710_v51, %s1076_s23  ;;  %v1031_v61 = vpack.c.bf16 %v712_v58, %v710_v51  ;;  %v928_v51 = vld [vmem:[%s1398_s12] sm:$0x3] }
 0x45e   :  { %750 = vrot.lane.b32.xlu1 %v711_v54, %s1076_s23  ;;  %v1029_v62 = vpack.c.bf16 %v713_v59, %v711_v54  ;;  %v933_v56 = vrot.slane %v928_v51, %v1243_v60 }
 0x461   :  { %734 = vrot.lane.b32.xlu0 %v712_v58, %s1075_s6 }
 0x462   :  { %736 = vrot.lane.b32.xlu1 %v713_v59, %s1075_s6 }
 0x465   :  { %752 = vrot.lane.b32.xlu0 %v712_v58, %s1076_s23  ;;  %v937_v58 = vrot.slane %v928_v51, %v1248_v63 }
 0x466   :  { %754 = vrot.lane.b32.xlu1 %v713_v59, %s1076_s23 }
 0x469   :  { %792 = vperm.xlu0 %1049, %v786_v0  }
 0x46a   :  { %797 = vperm.xlu1 %1050, %v787_v2  }
 0x46d   :  { %802 = vperm.xlu0 %1049, %v788_v3  }
 0x46e   :  { %807 = vperm.xlu1 %1050, %v789_v4  }
 0x4cb   :  { %v731_v5 = vpop.permute.xlu0 %730 }
 0x4cc   :  { %744 = vst.msk [vmem:[#allocation5] sm:$0xff] %vm570_vm10, %v731_v5  ;;  %v733_v6 = vpop.permute.xlu1 %732 }
 0x4cd   :  { %v738_v7 = vsel %vm566_vm11, %v731_v5, %v733_v6 }
 0x4cf   :  { %v749_v8 = vpop.permute.xlu0 %748 }
 0x4d0   :  { %762 = vst.msk [vmem:[#allocation5 + $0x20] sm:$0xff] %vm581_vm12, %v749_v8  ;;  %v751_v9 = vpop.permute.xlu1 %750 }
 0x4d1   :  { %v756_v10 = vsel %vm577_vm13, %v749_v8, %v751_v9 }
 0x4d3   :  { %v735_v11 = vpop.permute.xlu0 %734  ;;  %v774_v18 = vld [vmem:[#allocation5] sm:$0xff] }
 0x4d4   :  { %746 = vst.msk [vmem:[#allocation5 + $0x10] sm:$0xff] %vm570_vm10, %v735_v11  ;;  %v737_v12 = vpop.permute.xlu1 %736 }
 0x4d5   :  { %v739_v13 = vsel %vm566_vm11, %v735_v11, %v737_v12 }
 0x4d6   :  { %v1021_v14 = vpack.c.bf16 %v739_v13, %v738_v7 }
 0x4d7   :  { %v753_v15 = vpop.permute.xlu0 %752  ;;  %v778_v22 = vld [vmem:[#allocation5 + $0x20] sm:$0xff] }
 0x4d8   :  { %764 = vst.msk [vmem:[#allocation5 + $0x30] sm:$0xff] %vm581_vm12, %v753_v15  ;;  %v755_v16 = vpop.permute.xlu1 %754  ;;  %1022 = vmatprep.subr.bf16.mxu0 %v1021_v14  ;;  %1033 = vmatprep.subr.bf16.mxu1 %v1021_v14 }
 0x4d9   :  { %v757_v17 = vsel %vm577_vm13, %v753_v15, %v755_v16 }
 0x4da   :  { %v1025_v21 = vpack.c.bf16 %v757_v17, %v756_v10 }
 0x4db   :  { %v776_v19 = vld [vmem:[#allocation5 + $0x10] sm:$0xff] }
 0x4dc   :  { %v1023_v20 = vpack.c.bf16 %v776_v19, %v774_v18 }
 0x4de   :  { %1024 = vmatpush1.bf16.msra.mxu0 %v1023_v20  ;;  %1036 = vmatpush1.bf16.msra.mxu1 %v1023_v20 }
 0x4df   :  { %1026 = vmatprep.subr.bf16.mxu0 %v1025_v21  ;;  %1034 = vmatprep.subr.bf16.mxu1 %v1025_v21  ;;  %v780_v23 = vld [vmem:[#allocation5 + $0x30] sm:$0xff] }
 0x4e0   :  { %v1027_v24 = vpack.c.bf16 %v780_v23, %v778_v22 }
 0x4e2   :  { %1028 = vmatpush1.bf16.msra.mxu0 %v1027_v24  ;;  %1037 = vmatpush1.bf16.msra.mxu1 %v1027_v24 }
 0x4e3   :  { %1030 = vmatprep.subr.bf16.mxu0 %v1029_v62  ;;  %1035 = vmatprep.subr.bf16.mxu1 %v1029_v62 }
 0x4e6   :  { %1032 = vmatpush1.bf16.msra.mxu0 %v1031_v61  ;;  %1038 = vmatpush1.bf16.msra.mxu1 %v1031_v61 }
 0x4e8   :  { %v793_v30 = vpop.permute.xlu0 %792 }
 0x4e9   :  { %965 = vmatmul.mubr.msk.f32.vlgmr.msra.gmra.mrb[4].mxu0 %vm810_vm15, %v770_v25  ;;  %968 = vmatmul.mubr.msk.f32.vlgmr.msra.gmra.mrb[6].mxu1 %vm810_vm15, %v773_v26  ;;  %v798_v29 = vpop.permute.xlu1 %797 }
 0x4ea   :  { %893 = vmatprep.mubr.f32.mxu0 %v1067_v1 }
 0x4ec   :  { %v803_v48 = vpop.permute.xlu0 %802 }
 0x4ed   :  { %966 = vmatmul.mubr.msk.f32.gmra.mrb[6].mxu0 %vm810_vm15, %v771_v27  ;;  %v808_v31 = vpop.permute.xlu1 %807 }
 0x4ee   :  { %899 = vmatprep.mubr.f32.mxu0 %v1067_v1 }
 0x4f1   :  { %967 = vmatmul.mubr.msk.f32.gmra.mrb[8].mxu0 %vm810_vm15, %v772_v28 }
 0x5bc   :  { %v889_v32 = vpop.f32.mrb[4].mxu0  ;;  %v907_v33 = vpop.f32.mrb[6].mxu1 }
 0x5bd   :  { %v890_v34 = vadd.f32 %v889_v32, %v793_v30  ;;  %v908_v35 = vadd.f32 %v907_v33, %v808_v31  ;;  %v891_v36 = vpop.f32.mrb[5].mxu0  ;;  %v909_v37 = vpop.f32.mrb[7].mxu1 }
 0x5be   :  { %v892_v38 = vadd.f32 %v891_v36, %v793_v30  ;;  %v910_v39 = vadd.f32 %v909_v37, %v808_v31 }
 0x5bf   :  { %v912_v40 = vmax.f32 %v890_v34, 0.0  ;;  %v918_v41 = vmax.f32 %v908_v35, 0.0 }
 0x5c0   :  { %v913_v42 = vmax.f32 %v892_v38, 0.0  ;;  %v919_v1 = vmax.f32 %v910_v39, 0.0  ;;  %v895_v43 = vpop.f32.mrb[6].mxu0 }
 0x5c1   :  { %1051 = vtanh.f32 %v912_v40  ;;  %v896_v44 = vadd.f32 %v895_v43, %v798_v29  ;;  %v897_v45 = vpop.f32.mrb[7].mxu0 }
 0x5c2   :  { %1053 = vtanh.f32 %v918_v41  ;;  %v898_v46 = vadd.f32 %v897_v45, %v798_v29 }
 0x5c3   :  { %1055 = vtanh.f32 %v913_v42  ;;  %v914_v47 = vmax.f32 %v896_v44, 0.0 }
 0x5c4   :  { %1057 = vtanh.f32 %v919_v1  ;;  %v915_v49 = vmax.f32 %v898_v46, 0.0  ;;  %v901_v50 = vpop.f32.mrb[8].mxu0 }
 0x5c5   :  { %1059 = vtanh.f32 %v914_v47  ;;  %v902_v52 = vadd.f32 %v901_v50, %v803_v48  ;;  %v903_v53 = vpop.f32.mrb[9].mxu0 }
 0x5c6   :  { %1061 = vtanh.f32 %v915_v49  ;;  %v904_v54 = vadd.f32 %v903_v53, %v803_v48 }
 0x5c7   :  { %v916_v55 = vmax.f32 %v902_v52, 0.0 }
 0x5c8   :  { %v917_v57 = vmax.f32 %v904_v54, 0.0 }
 0x5c9   :  { %1063 = vtanh.f32 %v916_v55 }
 0x5ca   :  { %1065 = vtanh.f32 %v917_v57 }
 0x5cb   :  { %v1052_v59 = vpop.eup %1051 }
 0x5cc   :  { %v1054_v61 = vpop.eup %1053  ;;  %v940_v62 = vmul.f32 %v1052_v59, %v933_v56 }
 0x5cd   :  { %v1056_v0 = vpop.eup %1055  ;;  %v946_v2 = vmul.f32 %v1054_v61, %v933_v56 }
 0x5ce   :  { %v1058_v3 = vpop.eup %1057  ;;  %948 = vst [vmem:[%s1399_s13] sm:$0xff] %v940_v62  ;;  %v941_v4 = vmul.f32 %v1056_v0, %v937_v58 }
 0x5cf   :  { %v1060_v5 = vpop.eup %1059  ;;  %954 = vst [vmem:[%s1399_s13 + $0x30] sm:$0x3] %v946_v2  ;;  %v947_v60 = vmul.f32 %v1058_v3, %v937_v58 }
 0x5d0   :  { %v1062_v6 = vpop.eup %1061  ;;  %949 = vst [vmem:[%s1399_s13 + $0x8] sm:$0xff] %v941_v4  ;;  %v942_v63 = vmul.f32 %v1060_v5, %v933_v56 }
 0x5d1   :  { %955 = vst [vmem:[%s1399_s13 + $0x38] sm:$0x3] %v947_v60  ;;  %v943_v7 = vmul.f32 %v1062_v6, %v937_v58 }
 0x5d2   :  { %950 = vst [vmem:[%s1399_s13 + $0x10] sm:$0xff] %v942_v63 }
 0x5d3   :  { %v1064_v8 = vpop.eup %1063  ;;  %951 = vst [vmem:[%s1399_s13 + $0x18] sm:$0xff] %v943_v7 }
 0x5d4   :  { %v1066_v9 = vpop.eup %1065  ;;  %v944_v10 = vmul.f32 %v1064_v8, %v933_v56 }
 0x5d5   :  { %v945_v11 = vmul.f32 %v1066_v9, %v937_v58 }
 0x5d6   :  { %952 = vst [vmem:[%s1399_s13 + $0x20] sm:$0xff] %v944_v10 }
 0x5d7   :  { %953 = vst [vmem:[%s1399_s13 + $0x28] sm:$0xff] %v945_v11 }

</bundles_post_ra>
